<compile_context>
chip_gen: v7x
topology: tpu7x:2x2x1
jax: 0.10.0
libtpu: 0.0.40
codegen_flags: <defaults>
</compile_context>

<pallas_src>
import functools

import jax
import jax.numpy as jnp
from jax.experimental import pallas as pl
from jax.experimental.pallas import tpu as pltpu


# ----------------------------- fused single-pass kernel ------------------------------

def _se_fused_kernel(x_ref, w1t_ref, w2t_ref, o_ref):
    # x_ref / o_ref: (b_tile, S, L) lane-dense block. L == C when C is a multiple of
    # 128, else L == W*C (W folded into the lane axis). w1t_ref: (C, C_r) == W1.T,
    # w2t_ref: (C_r, C) == W2.T, both VMEM-resident across the whole grid.
    bt, s, l = x_ref.shape
    c = w1t_ref.shape[0]
    w = l // c  # channel groups folded into the lane axis (1 when L == C)

    # squeeze: fp32-accumulated spatial mean straight off the ref (no fp32 block copy).
    # TODO(synk): if a bundle dump shows a materialized fp32 upcast of a bf16 block,
    # replace this with a fori_loop over 8-row sublane strips into a (bt, L) fp32 acc.
    col = jnp.sum(x_ref[...], axis=1, dtype=jnp.float32)                    # (bt, L)
    if w == 1:
        avg = col * (1.0 / s)                                               # (bt, C)
    else:
        avg = jnp.sum(col.reshape(bt, w, c), axis=1) * (1.0 / (s * w))      # (bt, C)

    # excite: tiny MLP gate on the MXU (fully hidden under the block DMA).
    hid = jnp.maximum(
        jnp.dot(avg, w1t_ref[...], preferred_element_type=jnp.float32), 0.0)
    gate = jax.nn.sigmoid(
        jnp.dot(hid, w2t_ref[...], preferred_element_type=jnp.float32))     # (bt, C)

    # scale: gate broadcast over the spatial axes; multiply in x's native dtype
    # (matches the PyTorch module, which multiplies in the input dtype).
    if w == 1:
        gate_row = gate.astype(o_ref.dtype)                                 # (bt, C)
    else:
        gate_row = jnp.tile(gate, (1, w)).astype(o_ref.dtype)               # (bt, W*C)
    o_ref[...] = x_ref[...] * gate_row[:, None, :]


# -------------------- fallback: two-pass, spatially tiled kernels --------------------

def _se_squeeze_kernel(x_ref, sum_ref):
    # x_ref: (1, s_tile, L); sum_ref: (1, 1, C) fp32, resident across the spatial grid
    # axis (accumulator pattern: same output block for every h step).
    @pl.when(pl.program_id(1) == 0)
    def _():
        sum_ref[...] = jnp.zeros_like(sum_ref)

    l = x_ref.shape[-1]
    c = sum_ref.shape[-1]
    w = l // c
    col = jnp.sum(x_ref[...], axis=1, dtype=jnp.float32)                    # (1, L)
    if w == 1:
        sum_ref[...] += col[:, None, :]
    else:
        sum_ref[...] += jnp.sum(col.reshape(1, w, c), axis=1)[:, None, :]


def _se_scale_kernel(sum_ref, w1t_ref, w2t_ref, x_ref, o_ref, *, inv_hw):
    # sum_ref: (1, 1, C) fp32 spatial sum; x_ref / o_ref: (1, s_tile, L).
    # The gate MLP is recomputed per block — it is tiny and hidden under the DMA.
    l = x_ref.shape[-1]
    c = sum_ref.shape[-1]
    w = l // c
    avg = sum_ref[0] * inv_hw                                               # (1, C)
    hid = jnp.maximum(
        jnp.dot(avg, w1t_ref[...], preferred_element_type=jnp.float32), 0.0)
    gate = jax.nn.sigmoid(
        jnp.dot(hid, w2t_ref[...], preferred_element_type=jnp.float32))     # (1, C)
    if w == 1:
        gate_row = gate.astype(o_ref.dtype)
    else:
        gate_row = jnp.tile(gate, (1, w)).astype(o_ref.dtype)               # (1, W*C)
    o_ref[...] = x_ref[...] * gate_row[:, None, :]


# ------------------------------------- wrapper ---------------------------------------

def se_layer(x, w1, w2, *, vmem_budget_bytes=None, donate_input=False):
    """x: (B, H, W, C); w1: (C_r, C); w2: (C, C_r). Returns (B, H, W, C)."""
    B, H, W, C = x.shape
    C_r = w1.shape[0]
    assert w1.shape == (C_r, C) and w2.shape == (C, C_r)

    # Physical per-TensorCore VMEM: 64 MiB on v7x, 128 MiB on v5e/v6e. All budgets and
    # limits are clamped against it with headroom (a 96 MiB-style cap is invalid on v7x).
    try:
        phys_vmem = int(pltpu.get_tpu_info().vmem_capacity_bytes)
    except Exception:
        phys_vmem = 64 * 1024 * 1024  # conservative default (v7x per-TC VMEM)
    if vmem_budget_bytes is None:
        # ~28-32 MiB: multi-MiB double-buffered blocks, well under the v7x ceiling.
        vmem_budget_bytes = min(32 * 1024 * 1024, phys_vmem // 2 - (4 << 20))
    vmem_budget_bytes = max(1, min(vmem_budget_bytes, phys_vmem - (16 << 20)))

    def _vmem_limit(block_bytes):
        return int(min(phys_vmem - (8 << 20),
                       max(32 * 1024 * 1024, 4 * block_bytes + (8 << 20))))

    # Transpose the tiny weights once outside the kernel (negligible one-time copy).
    w1t = jnp.asarray(w1).T  # (C, C_r)
    w2t = jnp.asarray(w2).T  # (C_r, C)

    # Lane-dense layout selection (both reshapes are contiguous, i.e. free in HBM).
    if C % 128 == 0:
        S, L = H * W, C          # C already lane-dense: gate broadcasts over sublanes
    else:
        S, L = H, W * C          # fold W into lanes: wide unmasked stores
    x_flat = x.reshape(B, S, L)

    itemsize = jnp.dtype(x.dtype).itemsize
    elem_bytes = S * L * itemsize  # bytes of one batch element

    # ---- b_tile: smallest block >= ~1 MiB that keeps the grid well pipelined --------
    def _pick_b_tile():
        MIN_BLOCK = 1 << 20  # ~1 MiB blocks already reach ~85% of HBM roofline
        best_key, best = None, None
        for d in range(1, B + 1):
            if B % d:
                continue
            if 4 * d * elem_bytes > vmem_budget_bytes:  # 2-in + 2-out double buffers
                continue
            steps = B // d
            key = (d * elem_bytes >= MIN_BLOCK,  # block big enough for roofline
                   min(steps, 4),                # pipeline ramp: prefer >= 4 grid steps
                   steps % 2 == 0,               # even grid: balanced across 2 TCs (v7x)
                   steps)                        # then the longest grid / smallest block
            if best_key is None or key > best_key:
                best_key, best = key, d
        return best

    b_tile = _pick_b_tile()

    if b_tile is not None:
        # ------------------------------ fused fast path -----------------------------
        grid = (B // b_tile,)
        out_flat = pl.pallas_call(
            _se_fused_kernel,
            out_shape=jax.ShapeDtypeStruct((B, S, L), x.dtype),
            grid_spec=pltpu.PrefetchScalarGridSpec(
                num_scalar_prefetch=0,
                grid=grid,
                in_specs=[
                    pl.BlockSpec((b_tile, S, L), lambda b: (b, 0, 0)),
                    pl.BlockSpec((C, C_r), lambda b: (0, 0)),   # resident weight
                    pl.BlockSpec((C_r, C), lambda b: (0, 0)),   # resident weight
                ],
                out_specs=pl.BlockSpec((b_tile, S, L), lambda b: (b, 0, 0)),
            ),
            compiler_params=pltpu.CompilerParams(
                dimension_semantics=("parallel",),
                vmem_limit_bytes=_vmem_limit(b_tile * elem_bytes),
            ),
            input_output_aliases=({0: 0} if donate_input else {}),
        )(x_flat, w1t, w2t)
        return out_flat.reshape(B, H, W, C)

    # ---- fallback: a single batch element exceeds the VMEM budget -------------------
    # Two-pass, spatially tiled path. Costs one extra read of x (3x vs 2x HBM traffic)
    # but stays pipelined instead of blowing VMEM (critical on v7x's 64 MiB).
    def _pick_s_tile():
        best = None
        for d in range(1, S + 1):
            if S % d:
                continue
            if d != S and d % 8:  # sublane-axis blocks must be multiples of 8
                continue
            if 4 * d * L * itemsize > vmem_budget_bytes:
                continue
            best = d if best is None else max(best, d)
        return best

    s_tile = _pick_s_tile()
    if s_tile is None:
        # TODO(synk): no multiple-of-8 divisor of the spatial axis fits the budget
        # (e.g. awkward/prime spatial extents); use the smallest legal tile and rely on
        # the explicit physical-VMEM-clamped limit below.
        s_tile = next((d for d in range(8, S + 1) if S % d == 0 and d % 8 == 0), S)

    grid = (B, S // s_tile)
    vmem_limit = _vmem_limit(s_tile * L * itemsize)

    # Pass 1: fp32 spatial sums per (batch, channel); the (1, 1, C) output block is
    # resident across the 'arbitrary' spatial grid axis (accumulator pattern).
    sums = pl.pallas_call(
        _se_squeeze_kernel,
        out_shape=jax.ShapeDtypeStruct((B, 1, C), jnp.float32),
        grid_spec=pltpu.PrefetchScalarGridSpec(
            num_scalar_prefetch=0,
            grid=grid,
            in_specs=[pl.BlockSpec((1, s_tile, L), lambda b, h: (b, h, 0))],
            out_specs=pl.BlockSpec((1, 1, C), lambda b, h: (b, 0, 0)),
        ),
        compiler_params=pltpu.CompilerParams(
            dimension_semantics=("parallel", "arbitrary"),
            vmem_limit_bytes=vmem_limit,
        ),
    )(x_flat)

    # Pass 2: gate + scale, fully parallel grid.
    out_flat = pl.pallas_call(
        functools.partial(_se_scale_kernel, inv_hw=1.0 / (H * W)),
        out_shape=jax.ShapeDtypeStruct((B, S, L), x.dtype),
        grid_spec=pltpu.PrefetchScalarGridSpec(
            num_scalar_prefetch=0,
            grid=grid,
            in_specs=[
                pl.BlockSpec((1, 1, C), lambda b, h: (b, 0, 0)),
                pl.BlockSpec((C, C_r), lambda b, h: (0, 0)),
                pl.BlockSpec((C_r, C), lambda b, h: (0, 0)),
                pl.BlockSpec((1, s_tile, L), lambda b, h: (b, h, 0)),
            ],
            out_specs=pl.BlockSpec((1, s_tile, L), lambda b, h: (b, h, 0)),
        ),
        compiler_params=pltpu.CompilerParams(
            dimension_semantics=("parallel", "parallel"),
            vmem_limit_bytes=vmem_limit,
        ),
        input_output_aliases=({3: 0} if donate_input else {}),
    )(sums, w1t, w2t, x_flat)
    return out_flat.reshape(B, H, W, C)


def se_layer_ref(x, w1, w2):
    """Pure-JAX reference mirroring the PyTorch forward."""
    xf = x.astype(jnp.float32)
    avg = jnp.mean(xf, axis=(1, 2))                       # (B, C)
    h = jnp.maximum(avg @ w1.T, 0.0)                      # (B, C_r)
    gate = jax.nn.sigmoid(h @ w2.T)                       # (B, C)
    return (xf * gate[:, None, None, :]).astype(x.dtype)


def _make_inputs(key, B, H, W, C, reduction):
    C_r = max(1, C // reduction)
    kx, k1, k2 = jax.random.split(key, 3)
    x = jax.random.normal(kx, (B, H, W, C), dtype=jnp.float32)
    w1 = jax.random.normal(k1, (C_r, C), dtype=jnp.float32) * (1.0 / jnp.sqrt(C))
    w2 = jax.random.normal(k2, (C, C_r), dtype=jnp.float32) * (1.0 / jnp.sqrt(C_r))
    return x, w1, w2


if __name__ == "__main__":
    key = jax.random.PRNGKey(0)
    k_a, k_b, k_c = jax.random.split(key, 3)

    # 1) Fused path, W-folded lane layout (C % 128 != 0).
    x, w1, w2 = _make_inputs(k_a, B=2, H=16, W=16, C=32, reduction=8)
    out = jax.block_until_ready(se_layer(x, w1, w2))
    ref = se_layer_ref(x, w1, w2)
    assert out.shape == x.shape
    assert jnp.allclose(out, ref, atol=1e-5, rtol=1e-5), float(jnp.max(jnp.abs(out - ref)))

    # 2) Fused path, C-lane-dense layout (C % 128 == 0).
    x, w1, w2 = _make_inputs(k_b, B=4, H=4, W=4, C=128, reduction=8)
    out = jax.block_until_ready(se_layer(x, w1, w2))
    ref = se_layer_ref(x, w1, w2)
    assert jnp.allclose(out, ref, atol=1e-5, rtol=1e-5), float(jnp.max(jnp.abs(out - ref)))

    # 3) Two-pass spatially tiled fallback, forced with a tiny VMEM budget.
    x, w1, w2 = _make_inputs(k_c, B=2, H=16, W=16, C=32, reduction=8)
    out = jax.block_until_ready(se_layer(x, w1, w2, vmem_budget_bytes=64 * 1024))
    ref = se_layer_ref(x, w1, w2)
    assert jnp.allclose(out, ref, atol=1e-5, rtol=1e-5), float(jnp.max(jnp.abs(out - ref)))

    print("KERNEL_OK")
</pallas_src>

<mosaic_0001>
module attributes {stable_mosaic.version = 11 : i64} {
  func.func @_se_fused_kernel(%arg0: i32, %arg1: memref<1x16x512xf32, #tpu.memory_space<vmem>>, %arg2: memref<32x4xf32, #tpu.memory_space<vmem>>, %arg3: memref<4x32xf32, #tpu.memory_space<vmem>>, %arg4: memref<1x16x512xf32, #tpu.memory_space<vmem>>) attributes {dimension_semantics = [#tpu.dimension_semantics<parallel>], iteration_bounds = array<i64: 2>, scalar_prefetch = 0 : i64, scratch_operands = 0 : i64, tpu.core_type = #tpu.core_type<tc>, window_params = [{transform_indices = @transform_0, window_bounds = array<i64: 1, 16, 512>}, {pipeline_mode = #tpu.pipeline_mode<synchronous>, transform_indices = @transform_1, window_bounds = array<i64: 32, 4>}, {pipeline_mode = #tpu.pipeline_mode<synchronous>, transform_indices = @transform_2, window_bounds = array<i64: 4, 32>}, {transform_indices = @transform_3, window_bounds = array<i64: 1, 16, 512>}]} {
    %c0 = arith.constant 0 : index
    %c0_0 = arith.constant 0 : index
    %c0_1 = arith.constant 0 : index
    %0 = vector.load %arg1[%c0, %c0_0, %c0_1] : memref<1x16x512xf32, #tpu.memory_space<vmem>>, vector<1x16x512xf32>
    %cst = arith.constant dense<0.000000e+00> : vector<1x512xf32>
    %1 = vector.multi_reduction <add>, %0, %cst [1] : vector<1x16x512xf32> to vector<1x512xf32>
    %2 = vector.shape_cast %1 : vector<1x512xf32> to vector<1x16x32xf32>
    %cst_2 = arith.constant dense<0.000000e+00> : vector<1x32xf32>
    %3 = vector.multi_reduction <add>, %2, %cst_2 [1] : vector<1x16x32xf32> to vector<1x32xf32>
    %cst_3 = arith.constant 3.906250e-03 : f32
    %4 = vector.broadcast %cst_3 : f32 to vector<1x32xf32>
    %5 = arith.mulf %3, %4 : vector<1x32xf32>
    %c0_4 = arith.constant 0 : index
    %c0_5 = arith.constant 0 : index
    %6 = vector.load %arg2[%c0_4, %c0_5] : memref<32x4xf32, #tpu.memory_space<vmem>>, vector<32x4xf32>
    %cst_6 = arith.constant dense<0.000000e+00> : vector<1x4xf32>
    %7 = tpu.matmul %5, %6, %cst_6 {dimension_numbers = #tpu.dot_dimension_numbers<[1], [0], [0], [1], [0, 0, 1, 1], [], []>} : vector<1x32xf32>, vector<32x4xf32>, vector<1x4xf32> -> vector<1x4xf32>
    %cst_7 = arith.constant 0.000000e+00 : f32
    %8 = vector.broadcast %cst_7 : f32 to vector<1x4xf32>
    %9 = arith.maximumf %7, %8 : vector<1x4xf32>
    %c0_8 = arith.constant 0 : index
    %c0_9 = arith.constant 0 : index
    %10 = vector.load %arg3[%c0_8, %c0_9] : memref<4x32xf32, #tpu.memory_space<vmem>>, vector<4x32xf32>
    %cst_10 = arith.constant dense<0.000000e+00> : vector<1x32xf32>
    %11 = tpu.matmul %9, %10, %cst_10 {dimension_numbers = #tpu.dot_dimension_numbers<[1], [0], [0], [1], [0, 0, 1, 1], [], []>} : vector<1x4xf32>, vector<4x32xf32>, vector<1x32xf32> -> vector<1x32xf32>
    %12 = arith.negf %11 : vector<1x32xf32>
    %13 = math.exp %12 : vector<1x32xf32>
    %cst_11 = arith.constant 1.000000e+00 : f32
    %14 = vector.broadcast %cst_11 : f32 to vector<1x32xf32>
    %15 = arith.addf %14, %13 : vector<1x32xf32>
    %16 = arith.divf %14, %15 : vector<1x32xf32>
    %17 = tpu.concatenate %16, %16, %16, %16, %16, %16, %16, %16, %16, %16, %16, %16, %16, %16, %16, %16 in 1 : vector<1x32xf32>, vector<1x32xf32>, vector<1x32xf32>, vector<1x32xf32>, vector<1x32xf32>, vector<1x32xf32>, vector<1x32xf32>, vector<1x32xf32>, vector<1x32xf32>, vector<1x32xf32>, vector<1x32xf32>, vector<1x32xf32>, vector<1x32xf32>, vector<1x32xf32>, vector<1x32xf32>, vector<1x32xf32> -> vector<1x512xf32>
    %c0_12 = arith.constant 0 : index
    %c0_13 = arith.constant 0 : index
    %c0_14 = arith.constant 0 : index
    %18 = vector.load %arg1[%c0_12, %c0_13, %c0_14] : memref<1x16x512xf32, #tpu.memory_space<vmem>>, vector<1x16x512xf32>
    %19 = vector.shape_cast %17 : vector<1x512xf32> to vector<1x1x512xf32>
    %20 = vector.broadcast %19 : vector<1x1x512xf32> to vector<1x16x512xf32>
    %21 = arith.mulf %18, %20 : vector<1x16x512xf32>
    %c0_15 = arith.constant 0 : index
    %c0_16 = arith.constant 0 : index
    %c0_17 = arith.constant 0 : index
    %22 = vector.load %arg4[%c0_15, %c0_16, %c0_17] : memref<1x16x512xf32, #tpu.memory_space<vmem>>, vector<1x16x512xf32>
    tpu.vector_store %arg4[%c0_15, %c0_16, %c0_17], %21 {strides = array<i32>} : memref<1x16x512xf32, #tpu.memory_space<vmem>>, vector<1x16x512xf32>,
    return
  }
  func.func @transform_0(%arg0: i32) -> (i32, i32, i32) {
    %c0_i32 = arith.constant 0 : i32
    %c0_i32_0 = arith.constant 0 : i32
    %c0_i32_1 = arith.constant 0 : i32
    return %arg0, %c0_i32, %c0_i32_0 : i32, i32, i32
  }
  func.func @transform_1(%arg0: i32) -> (i32, i32) {
    %c0_i32 = arith.constant 0 : i32
    %c0_i32_0 = arith.constant 0 : i32
    %c0_i32_1 = arith.constant 0 : i32
    return %c0_i32, %c0_i32_0 : i32, i32
  }
  func.func @transform_2(%arg0: i32) -> (i32, i32) {
    %c0_i32 = arith.constant 0 : i32
    %c0_i32_0 = arith.constant 0 : i32
    %c0_i32_1 = arith.constant 0 : i32
    return %c0_i32, %c0_i32_0 : i32, i32
  }
  func.func @transform_3(%arg0: i32) -> (i32, i32, i32) {
    %c0_i32 = arith.constant 0 : i32
    %c0_i32_0 = arith.constant 0 : i32
    %c0_i32_1 = arith.constant 0 : i32
    return %arg0, %c0_i32, %c0_i32_0 : i32, i32, i32
  }
}

</mosaic_0001>

<bundles_post_ra>
// kernel: tpu_custom_call.1
= control target key start
LH: loop header
LB: loop body
LE: loop exit
PB: predicated region body
PF: predicated region fallthrough
CT: control target
= control target key end

     0   :  { %8 = vsyncpa [#allocation3], 0  ;;  %s1150_s0 = inlined_call_operand.hbm [shape: f32[2,16,512], index: 0, kind: input, shape index: {}]   ;;  %s1151_s1 = inlined_call_operand.vmem [shape: f32[32,4], index: 1, kind: input, shape index: {}]   ;;  %s1152_s2 = inlined_call_operand.vmem [shape: f32[4,32], index: 2, kind: input, shape index: {}]   ;;  %s1153_s3 = inlined_call_operand.hbm [shape: f32[2,16,512], index: 3, kind: output, shape index: {}]  }
   0x1   :  { %10 = vsyncpa [#allocation3 + $0x1], 0 }
   0x2   :  { %11 = vsyncpa [#allocation4], 0 }
   0x3   :  { %13 = vsyncpa [#allocation4 + $0x1], 0  ;;  %s900_s12 = smov 0   ;;  %s902_s13 = smov 0  }
   0x4   :  { %s904_s14 = smov 0   ;;  %s906_s15 = smov 0  }
   0x5 LB: > { %s921_s16 = sadd.s32 4294967295, %s865_s15   ;;  %s659_s17 = sadd.s32 4294967294, %s865_s15   ;;  %s865_s15 = sphi %s906_s15, %s1166_s15   ;;  %s861_s14 = sphi %s904_s14, %s1165_s14   ;;  %s857_s13 = sphi %s902_s13, %s1164_s13   ;;  %s853_s12 = sphi %s900_s12, %s1163_s12  }
   0x6   : > { %s925_s18 = sadd.s32 1, %s865_s15   ;;  %s26_s19 = sadd.s32 1, %s861_s14 }
   0x7   : > { %s23_s20 = ssub.s32 %s865_s15, %s925_s18  ;;  %p33_p0 = scmp.ne.s32.totalorder %s861_s14, %s857_s13 }
   0x8   : > { %p24_p1 = scmp.eq.s32.totalorder %s23_s20, 0  ;;  %p34_p2 = scmp.eq.s32.totalorder %s865_s15, 0 }
   0x9   : > { %p39_p3 = scmp.ne.s32.totalorder %s857_s13, %s853_s12  ;;  %p40_p4 = scmp.eq.s32.totalorder %s921_s16, 0 }
   0xa   : > { %s937_s21 = scalar_select %p24_p1, %s861_s14, %s26_s19  }
   0xb   : > { %p939_p5 = por %p34_p2, %p33_p0  ;;  %p943_p6 = por %p40_p4, %p39_p3 }
   0xc   : > { %p105_p7 = scmp.eq.s32.totalorder %s921_s16, 1  ;;  %p111_p8 = scmp.eq.s32.totalorder %s659_s17, 1 }
   0xd   : > { %p720_p10 = scmp.lt.s32.totalorder %s865_s15, 2  ;;  %s137_s26 = sand.u32 1, %s861_s14  }
   0xe   : > { %p950_p11 = por %p105_p7, %p33_p0  ;;  %p954_p12 = por %p111_p8, %p39_p3 }
   0xf   : > { %s677_s27 = sshll.u32 %s865_s15, 10  ;;  %s662_s28 = sshll.u32 %s137_s26, 6 }
  0x10   : > { %s1157_s24 = scalar_select %p950_p11, 1, 0 }
  0x11   : > { %s1158_s25 = scalar_select %p954_p12, 1, 0 }
  0x12   : > { %s963_s4 = scalar_lea.hbm %s1150_s0, %s677_s27  ;;  %s141_s5 = scalar_lea.vmem [#allocation2], %s662_s28 }
  0x13   : > { %s148_s6 = sshll.u32 %s141_s5, 4  ;;  %p967_p13 = pnand %p720_p10, %p939_p5  ;;  %s971_s6 = int_to_ptr.vmem [resolvable:$true] %s148_s6 }
  0x14   : > { %s973_s8 = scalar_lea.sflag [#allocation3], %s137_s26  ;;  %s769_s9 = scalar_lea.hbm %s963_s4, 1024 }
  0x15   : > { %p770_p0 = scmp.ne.s32.totalorder %s963_s4, %s769_s9  ;;  %p771_p1 = pneg %p967_p13 }
  0x16   : > { %s774_s17 = scalar_lea.hbm %s1150_s0, 2048  ;;  %p775_p4 = scmp.lt.u32.totalorder %s963_s4, %s1150_s0 }
  0x17   : > { %p772_p2 = pnand %p771_p1, %p770_p0  ;;  %p776_p5 = scmp.lt.u32.totalorder %s774_s17, %s769_s9 }
  0x18   : > { %p778_p8 = scmp.lt.u32.totalorder %s769_s9, %s963_s4 }
  0x19   : > { %p773_p3 = pneg %p772_p2  ;;  %p777_p7 = por %p776_p5, %p775_p4 }
  0x1b   : > { %p779_p10 = por %p778_p8, %p777_p7 }
  0x1d   : > { %p780_p9 = pnand %p779_p10, %p773_p3 }
  0x1f   : > { %783 = shalt.err (!%p780_p9)
}
  0x20   : > { %s784_s22 = scalar_lea.vmem %s971_s6, 1024  ;;  %s867_s26 = smov [#allocation2]  }
  0x21   : > { %p785_p0 = scmp.ne.s32.totalorder %s971_s6, %s784_s22  ;;  %s789_s27 = sshll.u32 %s867_s26, 4  ;;  %s790_s27 = int_to_ptr.vmem [resolvable:$false] %s789_s27 }
  0x22   : > { %s791_s28 = scalar_lea.vmem %s790_s27, 2048  ;;  %p792_p11 = scmp.lt.s32.totalorder %s971_s6, %s790_s27 }
  0x23   : > { %p787_p2 = pnand %p785_p0, %p771_p1  ;;  %p793_p4 = scmp.lt.s32.totalorder %s791_s28, %s784_s22 }
  0x25   : > { %p788_p12 = pneg %p787_p2  ;;  %p794_p5 = por %p793_p4, %p792_p11 }
  0x27   : > { %p795_p7 = pnand %p794_p5, %p788_p12 }
  0x29   : > { %798 = shalt.err (!%p795_p7)
}
  0x2a   : > { %s868_s29 = smov 512   ;;  %s869_s30 = smov 32  }
  0x2b   : > { %715 = dma.hbm_to_vmem [thread:$0]  (!%p967_p13), %s963_s4, 1024, %s971_s6, %s973_s8, %s868_s29, %s868_s29, %s869_s30  }
  0x2c   : > { %p665_p9 = scmp.ge.s32.totalorder %s865_s15, 1  ;;  %p156_p1 = scmp.lt.s32.totalorder %s865_s15, 3 }
  0x2e   : > { %p157_p3 = pnand %p665_p9, %p156_p1 }
  0x2f   : > { %s1004_s5 = sand.u32 (!%p157_p3), 1, %s857_s13  }
  0x30   : > { %160 = sbr.rel (%p157_p3) target bundleno = 828 (0x33c), region = 32  ;;  %s666_s9 = sshll.u32 (!%p157_p3), %s1004_s5, 6 }
  0x31   : > { %s163_s10 = scalar_lea.sflag (!%p157_p3), [#allocation3], %s1004_s5  ;;  %s166_s11 = scalar_lea.vmem (!%p157_p3), [#allocation2], %s666_s9 }
  0x37   : > { %844 = dma.done.wait (%p943_p6), %s163_s10, 1024  }
  0x38   : > { %846 = vsyncadd (%p943_p6), %s163_s10, 4294966272  ;;  %v1014_v0 = vld [vmem:[%s166_s11] sm:$0xff]  ;;  %v1018_v2 = vld [vmem:[%s166_s11 + $0x8] sm:$0xff]  ;;  %s870_s23 = smov 32   ;;  %s871_s4 = smov 96   ;;  %v873_v41 = vmov 0.0|0.0   ;;  %v269_v50 = vlaneseq }
  0x39   : > { %v1016_v1 = vld [vmem:[%s166_s11 + $0x20] sm:$0xff]  ;;  %v1022_v4 = vld [vmem:[%s166_s11 + $0x28] sm:$0xff]  ;;  %v1024_v5 = vld [vmem:[%s166_s11 + $0x10] sm:$0xff]  ;;  %s872_s6 = smov 64   ;;  %702 = vmatprep.subr.bf16.mxu0 %v873_v41  ;;  %vm874_vm0 = vmmov 0   ;;  %v875_v42 = vmov 0.0  }
  0x3a   : > { %v197_v3 = vadd.f32 %v1016_v1, %v1014_v0  ;;  %v1026_v6 = vld [vmem:[%s166_s11 + $0x30] sm:$0xff]  ;;  %v204_v7 = vadd.f32 %v1022_v4, %v1018_v2  ;;  %v1032_v9 = vld [vmem:[%s166_s11 + $0x18] sm:$0xff]  ;;  %v374_v36 = vld [vmem:[%s1151_s1] sm:$0xff]  ;;  %694 = vmatprep.mubr.msk.f32.mxu0 %vm874_vm0, %v875_v42  ;;  %697 = vmatprep.subr.mxu1 %v875_v42  ;;  %v876_v48 = vmov 1983009808   ;;  %v1072_v54 = vshrl.u32 %v269_v50, 7 }
  0x3b   : > { %v211_v8 = vadd.f32 %v1026_v6, %v1024_v5  ;;  %v1034_v10 = vld [vmem:[%s166_s11 + $0x38] sm:$0xff]  ;;  %v375_v37 = vld [vmem:[%s1151_s1 + $0x8] sm:$0xff]  ;;  %v376_v38 = vld [vmem:[%s1151_s1 + $0x10] sm:$0xff]  ;;  %699 = vmatprep.mubr.msk.f32.mxu1 %vm874_vm0, %v875_v42  ;;  %v267_v49 = vunpack.c.l.s4 %v876_v48  ;;  %v877_v57 = vmov 1934713408   ;;  %vm363_vm1 = vcmask 261120  }
  0x3c   : > { %v198_v11 = vrot.slane %v197_v3, 4  ;;  %v218_v12 = vadd.f32 %v1034_v10, %v1032_v9  ;;  %v205_v13 = vrot.slane %v204_v7, 4  ;;  %v703_v39 = vpack.c.bf16 %v375_v37, %v374_v36  ;;  %v377_v40 = vld [vmem:[%s1151_s1 + $0x18] sm:$0xff]  ;;  %s678_s30 = sshll.u32 %s921_s16, 10  ;;  %s188_s10 = scalar_lea.vmem [#allocation5], %s666_s9 }
  0x3d   : > { %v212_v14 = vrot.slane %v211_v8, 4  ;;  %v706_v43 = vpack.c.bf16 %v377_v40, %v376_v38  ;;  %v268_v53 = vunpack.c.0.s8 %v267_v49  ;;  %v299_v58 = vunpack.c.l.s4 %v877_v57  ;;  %s586_s11 = sshll.u32 %s188_s10, 4  ;;  %s1099_s7 = scalar_lea.hbm %s1153_s3, %s678_s30  ;;  %s1105_s11 = int_to_ptr.vmem [resolvable:$true] %s586_s11 }
  0x3e   : > { %v199_v15 = vadd.f32 %v198_v11, %v197_v3  ;;  %v206_v16 = vadd.f32 %v205_v13, %v204_v7  ;;  %v219_v19 = vrot.slane %v218_v12, 4  ;;  %704 = vmatpush3.bf16.msra.mxu0 %v703_v39  ;;  %vm457_vm2 = vcmask 1043456   ;;  %s573_s16 = scalar_lea.sflag [#allocation4], %s1004_s5  ;;  %s799_s9 = scalar_lea.vmem %s1105_s11, 1024 }
  0x3f   : > { %v213_v18 = vadd.f32 %v212_v14, %v211_v8  ;;  %705 = vmatprep.subr.bf16.mxu0 %v873_v41  ;;  %v271_v61 = vsub.s32 %v268_v53, %v1072_v54  ;;  %v300_v8 = vunpack.c.0.s8 %v299_v58  ;;  %vm453_vm3 = vcmask 31744   ;;  %p800_p6 = scmp.ne.s32.totalorder %s1105_s11, %s799_s9  ;;  %p1160_p11 = scmp.ne.s32.totalorder %s1157_s24, 0 }
  0x40   : > { %v200_v17 = vrot.slane %v199_v15, 2  ;;  %v207_v20 = vrot.slane %v206_v16, 2  ;;  %v220_v25 = vadd.f32 %v219_v19, %v218_v12  ;;  %vm548_vm4 = vcmask 523264   ;;  %s878_s8 = smov [#allocation5]  }
  0x41   : > { %v214_v24 = vrot.slane %v213_v18, 2  ;;  %v303_v19 = vsub.s32 %v300_v8, %v1072_v54  ;;  %vm550_vm5 = vcmask 785408   ;;  %p801_p12 = pnand %p800_p6, %p1160_p11  ;;  %s803_s17 = sshll.u32 %s878_s8, 4  ;;  %s804_s17 = int_to_ptr.vmem [resolvable:$false] %s803_s17 }
  0x42   : > { %v201_v21 = vadd.f32 %v200_v17, %v199_v15  ;;  %v208_v22 = vadd.f32 %v207_v20, %v206_v16  ;;  %v221_v30 = vrot.slane %v220_v25, 2  ;;  %707 = vmatpush3.bf16.msra.mxu0 %v706_v43  ;;  %s805_s19 = scalar_lea.vmem %s804_s17, 2048  ;;  %p806_p8 = scmp.lt.s32.totalorder %s1105_s11, %s804_s17 }
  0x43   : > { %v215_v29 = vadd.f32 %v214_v24, %v213_v18  ;;  %p802_p13 = pneg %p801_p12  ;;  %p807_p10 = scmp.lt.s32.totalorder %s805_s19, %s799_s9 }
  0x44   : > { %v202_v23 = vrot.slane %v201_v21, 1  ;;  %v209_v26 = vrot.slane %v208_v22, 1  ;;  %v222_v32 = vadd.f32 %v221_v30, %v220_v25 }
  0x45   : > { %v216_v31 = vrot.slane %v215_v29, 1  ;;  %p808_p0 = por %p807_p10, %p806_p8 }
  0x46   : > { %v1038_v27 = vadd.f32 %v202_v23, %v201_v21  ;;  %v210_v28 = vadd.f32 %v209_v26, %v208_v22  ;;  %v223_v34 = vrot.slane %v222_v32, 1 }
  0x47   : > { %v217_v33 = vadd.f32 %v216_v31, %v215_v29  ;;  %p809_p2 = pnand %p808_p0, %p802_p13 }
  0x48   : > { %232 = vrot.lane.b32.xlu1 %v1038_v27, %s870_s23  ;;  %226 = vrot.lane.b32.xlu0 %v1038_v27, %s871_s4  ;;  %v1051_v35 = vadd.f32 %v223_v34, %v222_v32 }
  0x4c   : > { %236 = vrot.lane.b32.xlu1 %v210_v28, %s871_s4  ;;  %229 = vrot.lane.b32.xlu0 %v1038_v27, %s872_s6 }
  0x50   : > { %242 = vrot.lane.b32.xlu1 %v210_v28, %s870_s23  ;;  %239 = vrot.lane.b32.xlu0 %v210_v28, %s872_s6 }
  0x54   : > { %249 = vrot.lane.b32.xlu1 %v217_v33, %s872_s6  ;;  %246 = vrot.lane.b32.xlu0 %v217_v33, %s871_s4 }
  0x58   : > { %256 = vrot.lane.b32.xlu1 %v1051_v35, %s871_s4  ;;  %252 = vrot.lane.b32.xlu0 %v217_v33, %s870_s23 }
  0x5c   : > { %262 = vrot.lane.b32.xlu1 %v1051_v35, %s870_s23  ;;  %259 = vrot.lane.b32.xlu0 %v1051_v35, %s872_s6 }
  0xba   : > { %v233_v44 = vpop.permute.xlu1 %232  ;;  %v227_v45 = vpop.permute.xlu0 %226 }
  0xbb   : > { %v273_v63 = vcombine.low %v227_v45, %v233_v44 }
  0xbd   : > { %v280_v16 = vrot.slane %v273_v63, %v271_v61 }
  0xbe   : > { %v237_v46 = vpop.permute.xlu1 %236  ;;  %v230_v47 = vpop.permute.xlu0 %229 }
  0xbf   : > { %v265_v62 = vcombine.low %v1038_v27, %v230_v47 }
  0xc1   : > { %v272_v13 = vrot.slane %v265_v62, %v271_v61 }
  0xc2   : > { %v243_v51 = vpop.permute.xlu1 %242  ;;  %v240_v52 = vpop.permute.xlu0 %239 }
  0xc3   : > { %v289_v55 = vcombine.low %v237_v46, %v243_v51  ;;  %v281_v56 = vcombine.low %v210_v28, %v240_v52  ;;  %v297_v22 = vcombine.low %v272_v13, %v280_v16  ;;  %v452_v46 = vld [vmem:[%s1152_s2] sm:$0xf] }
  0xc4   : > { %698 = vmatpush3.msk.msra.mxu1 %vm457_vm2, %v452_v46 }
  0xc5   : > { %v296_v3 = vrot.slane %v289_v55, %v271_v61  ;;  %v288_v7 = vrot.slane %v281_v56, %v271_v61  ;;  %v304_v30 = vrot.slane %v297_v22, %v303_v19 }
  0xc6   : > { %v250_v59 = vpop.permute.xlu1 %249  ;;  %v247_v60 = vpop.permute.xlu0 %246 }
  0xc7   : > { %v314_v14 = vcombine.low %v217_v33, %v250_v59  ;;  %v305_v17 = vcombine.low %v288_v7, %v296_v3 }
  0xc9   : > { %v321_v23 = vrot.slane %v314_v14, %v271_v61  ;;  %v312_v26 = vrot.slane %v305_v17, %v303_v19 }
  0xca   : > { %v257_v11 = vpop.permute.xlu1 %256  ;;  %v253_v12 = vpop.permute.xlu0 %252 }
  0xcb   : > { %v322_v15 = vcombine.low %v247_v60, %v253_v12  ;;  %v313_v32 = vcombine.low %v304_v30, %v312_v26  ;;  %v554_v60 = vsub.s32 0, %v1072_v54 }
  0xcd   : > { %v329_v18 = vrot.slane %v322_v15, %v271_v61  ;;  %v364_v37 = vsel %vm363_vm1, %v313_v32, 0.0 }
  0xce   : > { %v263_v20 = vpop.permute.xlu1 %262  ;;  %v260_v21 = vpop.permute.xlu0 %259 }
  0xcf   : > { %v338_v24 = vcombine.low %v257_v11, %v263_v20  ;;  %v330_v25 = vcombine.low %v1051_v35, %v260_v21  ;;  %v346_v27 = vcombine.low %v321_v23, %v329_v18 }
  0xd1   : > { %v345_v28 = vrot.slane %v338_v24, %v271_v61  ;;  %v337_v29 = vrot.slane %v330_v25, %v271_v61  ;;  %v353_v33 = vrot.slane %v346_v27, %v303_v19 }
  0xd3   : > { %v354_v31 = vcombine.low %v337_v29, %v345_v28 }
  0xd5   : > { %v361_v34 = vrot.slane %v354_v31, %v303_v19 }
  0xd7   : > { %v362_v36 = vcombine.low %v353_v33, %v361_v34 }
  0xd9   : > { %v365_v38 = vsel %vm363_vm1, %v362_v36, 0.0 }
  0xda   : > { %v366_v39 = vadd.f32 %v365_v38, %v364_v37 }
  0xdc   : > { %v367_v40 = vrot.slane %v366_v39, 4 }
  0xde   : > { %v368_v41 = vadd.f32 %v367_v40, %v366_v39 }
  0xe0   : > { %v369_v42 = vrot.slane %v368_v41, 2 }
  0xe2   : > { %v370_v35 = vadd.f32 %v369_v42, %v368_v41 }
  0xe4   : > { %v371_v43 = vrot.slane %v370_v35, 1 }
  0xe6   : > { %v372_v44 = vadd.f32 %v371_v43, %v370_v35 }
  0xe8   : > { %v373_v45 = vmul.f32 0.00390625, %v372_v44 }
  0xea   : > { %695 = vmatmul.mubr.msk.f32.vlgmr.msra.gmra.mrb[0].mxu0 %vm363_vm1, %v373_v45 }
 0x1bd   : > { %v447_v47 = vpop.f32.mrb[0].mxu0 }
 0x1be   : > { %v451_v48 = vmax.f32 %v447_v47, 0.0  ;;  %v696_v49 = vpop.f32.mrb[1].mxu0 }
 0x1c0   : > { %700 = vmatmul.mubr.msk.f32.vlgmr.msra.gmra.mrb[0].mxu1 %vm453_vm3, %v451_v48 }
 0x293   : > { %v527_v50 = vpop.f32.mrb[0].mxu1 }
 0x294   : > { %v671_v51 = vmul.f32 -1.442695, %v527_v50  ;;  %v701_v52 = vpop.f32.mrb[1].mxu1 }
 0x296   : > { %765 = vpow2.f32 %v671_v51 }
 0x2a0   : > { %v766_v53 = vpop.eup %765 }
 0x2a1   : > { %v534_v55 = vadd.f32 1.0, %v766_v53 }
 0x2a3   : > { %767 = vrcp.f32 %v534_v55 }
 0x2ad   : > { %v768_v56 = vpop.eup %767 }
 0x2ae   : > { %541 = vrot.lane.b32.xlu1 %v768_v56, %s872_s6  ;;  %538 = vrot.lane.b32.xlu0 %v768_v56, %s870_s23 }
 0x2b2   : > { %544 = vrot.lane.b32.xlu0 %v768_v56, %s871_s4 }
 0x320   : > { %v539_v57 = vpop.permute.xlu0 %538  ;;  %v542_v58 = vpop.permute.xlu1 %541 }
 0x321   : > { %v547_v59 = vsel %vm363_vm1, %v768_v56, %v539_v57 }
 0x322   : > { %v549_v61 = vsel %vm548_vm4, %v547_v59, %v542_v58 }
 0x324   : > { %v545_v62 = vpop.permute.xlu0 %544 }
 0x325   : > { %v551_v63 = vsel %vm550_vm5, %v549_v61, %v545_v62 }
 0x326   : > { %v555_v3 = vrot.slane %v551_v63, %v554_v60 }
 0x328   : > { %v556_v7 = vmul.f32 %v555_v3, %v1014_v0  ;;  %v557_v8 = vmul.f32 %v555_v3, %v1018_v2  ;;  %v558_v11 = vmul.f32 %v555_v3, %v1024_v5  ;;  %v559_v12 = vmul.f32 %v555_v3, %v1032_v9 }
 0x329   : > { %v560_v54 = vmul.f32 %v555_v3, %v1016_v1  ;;  %v561_v13 = vmul.f32 %v555_v3, %v1022_v4  ;;  %v562_v14 = vmul.f32 %v555_v3, %v1026_v6  ;;  %v563_v0 = vmul.f32 %v555_v3, %v1034_v10 }
 0x32a   : > { %564 = vst [vmem:[%s188_s10] sm:$0xff] %v556_v7  ;;  %565 = vst [vmem:[%s188_s10 + $0x8] sm:$0xff] %v557_v8 }
 0x32b   : > { %566 = vst [vmem:[%s188_s10 + $0x10] sm:$0xff] %v558_v11  ;;  %567 = vst [vmem:[%s188_s10 + $0x18] sm:$0xff] %v559_v12 }
 0x32c   : > { %568 = vst [vmem:[%s188_s10 + $0x20] sm:$0xff] %v560_v54  ;;  %569 = vst [vmem:[%s188_s10 + $0x28] sm:$0xff] %v561_v13 }
 0x32d   : > { %570 = vst [vmem:[%s188_s10 + $0x30] sm:$0xff] %v562_v14  ;;  %571 = vst [vmem:[%s188_s10 + $0x38] sm:$0xff] %v563_v0 }
 0x32e   : > { %812 = shalt.err (!%p809_p2)
}
 0x32f   : > { %s813_s20 = scalar_lea.hbm %s1099_s7, 1024  ;;  %s817_s27 = scalar_lea.hbm %s1153_s3, 2048 }
 0x330   : > { %p814_p4 = scmp.ne.s32.totalorder %s1099_s7, %s813_s20  ;;  %p818_p9 = scmp.lt.u32.totalorder %s1099_s7, %s1153_s3 }
 0x331   : > { %p819_p1 = scmp.lt.u32.totalorder %s817_s27, %s813_s20  ;;  %p821_p6 = scmp.lt.u32.totalorder %s813_s20, %s1099_s7 }
 0x332   : > { %p815_p5 = pnand %p814_p4, %p1160_p11 }
 0x333   : > { %p820_p3 = por %p819_p1, %p818_p9 }
 0x334   : > { %p816_p7 = pneg %p815_p5 }
 0x335   : > { %p822_p12 = por %p821_p6, %p820_p3 }
 0x337   : > { %p823_p13 = pnand %p822_p12, %p816_p7 }
 0x339   : > { %826 = shalt.err (!%p823_p13)
}
 0x33a   : > { %s879_s30 = smov 512  }
 0x33b   : > { %710 = dma.vmem_to_hbm [thread:$0]  (%p1160_p11), %s1105_s11, 1024, %s1099_s7, %s573_s16, %s879_s30, %s879_s30, %s870_s23  }
 0x33c PF: > { %s601_s10 = sand.u32 1, %s853_s12   ;;  %p1161_p8 = scmp.ne.s32.totalorder %s1158_s25, 0 }
 0x33d   : > { %p1162_p10 = scmp.ge.s32.totalorder %s865_s15, 2  ;;  %s602_s4 = scalar_lea.sflag [#allocation4], %s601_s10 }
 0x33f   : > { %p717_p0 = pnand %p1162_p10, %p1161_p8 }
 0x341   : > { %848 = dma.done.wait (!%p717_p0), %s602_s4, 1024  }
 0x342   : > { %850 = vsyncadd (!%p717_p0), %s602_s4, 4294966272  ;;  %p16_p2 = scmp.ge.s32.totalorder %s925_s18, 4   ;;  %s1163_s12 = smov %s857_s13 }
 0x343   : > { %s1164_s13 = smov %s861_s14  ;;  %s1165_s14 = smov %s937_s21 }
 0x344   : > { %s1166_s15 = smov %s925_s18  ;;  %18 = sbr.rel (!%p16_p2) target bundleno = 5 (0x5), region = 77 }
 0x34b   :  { %607 = vsyncpa [#allocation3], 1 }
 0x34c   :  { %609 = vsyncpa [#allocation3 + $0x1], 1 }
 0x34d   :  { %610 = vsyncpa [#allocation4], 1 }
 0x34e   :  { %612 = vsyncpa [#allocation4 + $0x1], 1 }

</bundles_post_ra>
